<compile_context>
chip_gen: v6e
topology: v6e:2x2x1
jax: 0.10.0
libtpu: 0.0.40
codegen_flags: <defaults>
</compile_context>

<pallas_src>
import functools

import jax
import jax.numpy as jnp
from jax import lax
from jax.experimental import pallas as pl
from jax.experimental.pallas import tpu as pltpu


def _attn_dropout_kernel(q_ref, k_ref, v_ref, bits_ref, o_ref, *, d, drop_p):
    # torch: scaled_qk = qk.div(d ** -0.5)  == qk * sqrt(d); fold into q.
    q = q_ref[...] * jnp.float32(d) ** 0.5

    # s = q @ k^T without materializing a transpose: contract last dim of both.
    s = lax.dot_general(
        q, k_ref[...],
        dimension_numbers=(((1,), (1,)), ((), ())),
        preferred_element_type=jnp.float32,
    )

    # Numerically stable softmax numerator (normalization deferred to the end).
    m = jnp.max(s, axis=-1, keepdims=True)
    e = jnp.exp(s - m)
    row_sum = jnp.sum(e, axis=-1, keepdims=True)

    # Dropout: keep with prob (1 - drop_p) via an integer threshold on raw
    # uint32 random bits; single select, no float conversion of the bits.
    threshold = jnp.uint32(int(round(drop_p * (2.0 ** 32))))
    keep = bits_ref[...] >= threshold
    e_kept = jnp.where(keep, e, 0.0)

    # PV matmul in bf16 (MXU-native), f32 accumulation.
    pv = jnp.dot(
        e_kept.astype(jnp.bfloat16),
        v_ref[...].astype(jnp.bfloat16),
        preferred_element_type=jnp.float32,
    )

    # Fused per-row scale: softmax denominator and inverted-dropout 1/(1-p),
    # applied to the (S, Dv) output instead of the (S, S) probability matrix.
    norm = 1.0 / (row_sum * jnp.float32(1.0 - drop_p))
    o_ref[...] = (pv * norm).astype(o_ref.dtype)


def model_forward(query, key, value, d, *, drop_p=0.1, seed=0):
    """Pallas equivalent of Model.forward(query, key, value, d)."""
    assert query.ndim == 3 and key.ndim == 3 and value.ndim == 3
    assert query.shape[0] == 1, "kernel handles batch=1 (squeezed)"
    _, S, _ = query.shape
    Dv = value.shape[-1]

    q2, k2, v2 = query[0], key[0], value[0]

    # Dropout randomness generated outside the kernel (portable, deterministic).
    # TODO(synk): torch dropout draws a fresh stateful mask each forward; here the
    # mask is a deterministic function of `seed`.
    bits = jax.random.bits(jax.random.PRNGKey(seed), (S, S), dtype=jnp.uint32)

    kernel = functools.partial(
        _attn_dropout_kernel, d=float(d), drop_p=float(drop_p)
    )

    out = pl.pallas_call(
        kernel,
        out_shape=jax.ShapeDtypeStruct((S, Dv), query.dtype),
        in_specs=[
            pl.BlockSpec(memory_space=pltpu.MemorySpace.VMEM),  # query
            pl.BlockSpec(memory_space=pltpu.MemorySpace.VMEM),  # key
            pl.BlockSpec(memory_space=pltpu.MemorySpace.VMEM),  # value
            pl.BlockSpec(memory_space=pltpu.MemorySpace.VMEM),  # dropout bits
        ],
        out_specs=pl.BlockSpec(memory_space=pltpu.MemorySpace.VMEM),
    )(q2, k2, v2, bits)

    return out[None]  # restore batch dim -> (1, S, Dv)


if __name__ == "__main__":
    d = 128
    B, S, Dqk, Dv = 1, 128, 64, 64

    root = jax.random.PRNGKey(0)
    kq, kk, kv = jax.random.split(root, 3)
    query = jax.random.normal(kq, (B, S, Dqk), dtype=jnp.float32)
    key = jax.random.normal(kk, (B, S, Dqk), dtype=jnp.float32)
    value = jax.random.normal(kv, (B, S, Dv), dtype=jnp.float32)

    out = model_forward(query, key, value, d, drop_p=0.1, seed=0)
    jax.block_until_ready(out)
    assert out.shape == (B, S, Dv)
    print("KERNEL_OK")
</pallas_src>

<mosaic_0001>
module attributes {stable_mosaic.version = 11 : i64} {
  func.func @_attn_dropout_kernel(%arg0: memref<128x64xf32, #tpu.memory_space<vmem>>, %arg1: memref<128x64xf32, #tpu.memory_space<vmem>>, %arg2: memref<128x64xf32, #tpu.memory_space<vmem>>, %arg3: memref<128x128xi32, #tpu.memory_space<vmem>>, %arg4: memref<128x64xf32, #tpu.memory_space<vmem>>) attributes {dimension_semantics = [], scalar_prefetch = 0 : i64, scratch_operands = 0 : i64, tpu.core_type = #tpu.core_type<tc>} {
    %c0 = arith.constant 0 : index
    %c0_0 = arith.constant 0 : index
    %0 = vector.load %arg0[%c0, %c0_0] : memref<128x64xf32, #tpu.memory_space<vmem>>, vector<128x64xf32>
    %cst = arith.constant 1.280000e+02 : f32
    %cst_1 = arith.constant 5.000000e-01 : f32
    %1 = math.powf %cst, %cst_1 : f32
    %2 = vector.broadcast %1 : f32 to vector<128x64xf32>
    %3 = arith.mulf %0, %2 : vector<128x64xf32>
    %c0_2 = arith.constant 0 : index
    %c0_3 = arith.constant 0 : index
    %4 = vector.load %arg1[%c0_2, %c0_3] : memref<128x64xf32, #tpu.memory_space<vmem>>, vector<128x64xf32>
    %cst_4 = arith.constant dense<0.000000e+00> : vector<128x128xf32>
    %5 = tpu.matmul %3, %4, %cst_4 {dimension_numbers = #tpu.dot_dimension_numbers<[1], [1], [0], [0], [0, 0, 1, 0], [], []>} : vector<128x64xf32>, vector<128x64xf32>, vector<128x128xf32> -> vector<128x128xf32>
    %cst_5 = arith.constant dense<0xFF800000> : vector<128xf32>
    %6 = vector.multi_reduction <maximumf>, %5, %cst_5 [1] : vector<128x128xf32> to vector<128xf32>
    %7 = vector.shape_cast %6 : vector<128xf32> to vector<128x1xf32>
    %8 = vector.broadcast %7 : vector<128x1xf32> to vector<128x128xf32>
    %9 = arith.subf %5, %8 : vector<128x128xf32>
    %10 = math.exp %9 : vector<128x128xf32>
    %cst_6 = arith.constant dense<0.000000e+00> : vector<128xf32>
    %11 = vector.multi_reduction <add>, %10, %cst_6 [1] : vector<128x128xf32> to vector<128xf32>
    %12 = vector.shape_cast %11 : vector<128xf32> to vector<128x1xf32>
    %c0_7 = arith.constant 0 : index
    %c0_8 = arith.constant 0 : index
    %13 = vector.load %arg3[%c0_7, %c0_8] : memref<128x128xi32, #tpu.memory_space<vmem>>, vector<128x128xi32>
    %c429496730_i32 = arith.constant 429496730 : i32
    %14 = vector.broadcast %c429496730_i32 : i32 to vector<128x128xi32>
    %15 = arith.cmpi uge, %13, %14 : vector<128x128xi32>
    %cst_9 = arith.constant 0.000000e+00 : f32
    %16 = vector.broadcast %cst_9 : f32 to vector<128x128xf32>
    %17 = arith.select %15, %10, %16 : vector<128x128xi1>, vector<128x128xf32>
    %18 = arith.truncf %17 : vector<128x128xf32> to vector<128x128xbf16>
    %c0_10 = arith.constant 0 : index
    %c0_11 = arith.constant 0 : index
    %19 = vector.load %arg2[%c0_10, %c0_11] : memref<128x64xf32, #tpu.memory_space<vmem>>, vector<128x64xf32>
    %20 = arith.truncf %19 : vector<128x64xf32> to vector<128x64xbf16>
    %cst_12 = arith.constant dense<0.000000e+00> : vector<128x64xf32>
    %21 = tpu.matmul %18, %20, %cst_12 {dimension_numbers = #tpu.dot_dimension_numbers<[1], [0], [0], [1], [0, 0, 1, 1], [], []>} : vector<128x128xbf16>, vector<128x64xbf16>, vector<128x64xf32> -> vector<128x64xf32>
    %cst_13 = arith.constant 0.899999976 : f32
    %22 = vector.broadcast %cst_13 : f32 to vector<128x1xf32>
    %23 = arith.mulf %12, %22 : vector<128x1xf32>
    %cst_14 = arith.constant 1.000000e+00 : f32
    %24 = vector.broadcast %cst_14 : f32 to vector<128x1xf32>
    %25 = arith.divf %24, %23 : vector<128x1xf32>
    %26 = vector.broadcast %25 : vector<128x1xf32> to vector<128x64xf32>
    %27 = arith.mulf %21, %26 : vector<128x64xf32>
    %c0_15 = arith.constant 0 : index
    %c0_16 = arith.constant 0 : index
    %28 = vector.load %arg4[%c0_15, %c0_16] : memref<128x64xf32, #tpu.memory_space<vmem>>, vector<128x64xf32>
    tpu.vector_store %arg4[%c0_15, %c0_16], %27 {strides = array<i32>} : memref<128x64xf32, #tpu.memory_space<vmem>>, vector<128x64xf32>,
    return
  }
}

</mosaic_0001>

<bundles_post_ra>
// kernel: tpu_custom_call.1
= control target key start
LH: loop header
LB: loop body
LE: loop exit
PB: predicated region body
PF: predicated region fallthrough
CT: control target
= control target key end

     0   :  { %vm66_vm0 = vcmask 523264   ;;  %s1341_s1 = inlined_call_operand.vmem [shape: f32[128,64], index: 1, kind: input, shape index: {}]   ;;  %s1342_s0 = inlined_call_operand.vmem [shape: f32[128,64], index: 0, kind: input, shape index: {}]   ;;  %s1343_s2 = inlined_call_operand.vmem [shape: f32[128,64], index: 2, kind: input, shape index: {}]   ;;  %s1344_s3 = inlined_call_operand.vmem [shape: u32[128,128], index: 3, kind: input, shape index: {}]   ;;  %s1345_s4 = inlined_call_operand.vmem [shape: f32[128,64], index: 4, kind: output, shape index: {}]  }
   0x1   :  { %v65_v0 = vld [vmem:[%s1341_s1 + $0x78] sm:$0xff]  ;;  %v64_v1 = vld [vmem:[%s1341_s1 + $0x70] sm:$0xff]  ;;  %v63_v2 = vld [vmem:[%s1341_s1 + $0x68] sm:$0xff] }
   0x2   :  { %785 = vmatprep.subr.msk.mxu0 %vm66_vm0, %v65_v0  ;;  %v18_v3 = vld [vmem:[%s1342_s0] sm:$0xff]  ;;  %v61_v6 = vld [vmem:[%s1341_s1 + $0x58] sm:$0xff]  ;;  %v60_v7 = vld [vmem:[%s1341_s1 + $0x50] sm:$0xff] }
   0x3   :  { %786 = vmatpush3.xpose.msk.msra.mxu0 %vm66_vm0, %v65_v0  ;;  %v34_v4 = vmul.f32 11.313708, %v18_v3  ;;  %v62_v5 = vld [vmem:[%s1341_s1 + $0x60] sm:$0xff]  ;;  %v59_v8 = vld [vmem:[%s1341_s1 + $0x48] sm:$0xff]  ;;  %v57_v10 = vld [vmem:[%s1341_s1 + $0x38] sm:$0xff] }
   0x4   :  { %787 = vmatprep.subr.msk.mxu0 %vm66_vm0, %v64_v1  ;;  %v58_v9 = vld [vmem:[%s1341_s1 + $0x40] sm:$0xff]  ;;  %v56_v11 = vld [vmem:[%s1341_s1 + $0x30] sm:$0xff]  ;;  %v55_v12 = vld [vmem:[%s1341_s1 + $0x28] sm:$0xff] }
   0x5   :  { %817 = vmatprep.mubr.msk.f32.mxu0 %vm66_vm0, %v34_v4  ;;  %v54_v13 = vld [vmem:[%s1341_s1 + $0x20] sm:$0xff]  ;;  %v53_v14 = vld [vmem:[%s1341_s1 + $0x18] sm:$0xff]  ;;  %v52_v15 = vld [vmem:[%s1341_s1 + $0x10] sm:$0xff] }
   0x6   :  { %v51_v16 = vld [vmem:[%s1341_s1 + $0x8] sm:$0xff]  ;;  %v50_v17 = vld [vmem:[%s1341_s1] sm:$0xff]  ;;  %v20_v19 = vld [vmem:[%s1342_s0 + $0x10] sm:$0xff] }
   0x7   :  { %788 = vmatpush3.xpose.msk.msra.mxu0 %vm66_vm0, %v64_v1  ;;  %v19_v18 = vld [vmem:[%s1342_s0 + $0x8] sm:$0xff]  ;;  %v36_v21 = vmul.f32 11.313708, %v20_v19  ;;  %v21_v22 = vld [vmem:[%s1342_s0 + $0x18] sm:$0xff]  ;;  %v22_v23 = vld [vmem:[%s1342_s0 + $0x20] sm:$0xff] }
   0x8   :  { %789 = vmatprep.subr.msk.mxu0 %vm66_vm0, %v63_v2  ;;  %v35_v20 = vmul.f32 11.313708, %v19_v18  ;;  %v37_v24 = vmul.f32 11.313708, %v21_v22  ;;  %v38_v25 = vmul.f32 11.313708, %v22_v23 }
   0x9   :  { %v23_v26 = vld [vmem:[%s1342_s0 + $0x28] sm:$0xff]  ;;  %v24_v27 = vld [vmem:[%s1342_s0 + $0x30] sm:$0xff]  ;;  %v25_v30 = vld [vmem:[%s1342_s0 + $0x38] sm:$0xff] }
   0xa   :  { %v39_v28 = vmul.f32 11.313708, %v23_v26  ;;  %v40_v29 = vmul.f32 11.313708, %v24_v27  ;;  %v26_v31 = vld [vmem:[%s1342_s0 + $0x40] sm:$0xff]  ;;  %v27_v34 = vld [vmem:[%s1342_s0 + $0x48] sm:$0xff] }
   0xb   :  { %790 = vmatpush3.xpose.msk.msra.mxu0 %vm66_vm0, %v63_v2  ;;  %v41_v32 = vmul.f32 11.313708, %v25_v30  ;;  %v42_v33 = vmul.f32 11.313708, %v26_v31  ;;  %v28_v35 = vld [vmem:[%s1342_s0 + $0x50] sm:$0xff]  ;;  %v29_v38 = vld [vmem:[%s1342_s0 + $0x58] sm:$0xff] }
   0xc   :  { %791 = vmatprep.subr.msk.mxu0 %vm66_vm0, %v62_v5  ;;  %v43_v36 = vmul.f32 11.313708, %v27_v34  ;;  %v44_v37 = vmul.f32 11.313708, %v28_v35  ;;  %v30_v39 = vld [vmem:[%s1342_s0 + $0x60] sm:$0xff]  ;;  %v31_v42 = vld [vmem:[%s1342_s0 + $0x68] sm:$0xff] }
   0xd   :  { %v45_v40 = vmul.f32 11.313708, %v29_v38  ;;  %v46_v41 = vmul.f32 11.313708, %v30_v39  ;;  %v32_v43 = vld [vmem:[%s1342_s0 + $0x70] sm:$0xff]  ;;  %v33_v46 = vld [vmem:[%s1342_s0 + $0x78] sm:$0xff] }
   0xe   :  { %v47_v44 = vmul.f32 11.313708, %v31_v42  ;;  %v48_v45 = vmul.f32 11.313708, %v32_v43  ;;  %v49_v47 = vmul.f32 11.313708, %v33_v46 }
   0xf   :  { %792 = vmatpush3.xpose.msk.msra.mxu0 %vm66_vm0, %v62_v5  ;;  %v490_v48 = vld [vmem:[%s1343_s2 + $0x70] sm:$0xff]  ;;  %v491_v49 = vld [vmem:[%s1343_s2 + $0x78] sm:$0xff]  ;;  %v488_v50 = vld [vmem:[%s1343_s2 + $0x60] sm:$0xff] }
  0x10   :  { %793 = vmatprep.subr.msk.mxu0 %vm66_vm0, %v61_v6  ;;  %v499_v51 = vpack.c.bf16 %v491_v49, %v490_v48  ;;  %v489_v52 = vld [vmem:[%s1343_s2 + $0x68] sm:$0xff]  ;;  %v486_v61 = vld [vmem:[%s1343_s2 + $0x50] sm:$0xff]  ;;  %v487_v62 = vld [vmem:[%s1343_s2 + $0x58] sm:$0xff] }
  0x11   :  { %v498_v53 = vpack.c.bf16 %v489_v52, %v488_v50  ;;  %v497_v63 = vpack.c.bf16 %v487_v62, %v486_v61  ;;  %v484_v2 = vld [vmem:[%s1343_s2 + $0x40] sm:$0xff]  ;;  %v485_v3 = vld [vmem:[%s1343_s2 + $0x48] sm:$0xff]  ;;  %v479_v18 = vld [vmem:[%s1343_s2 + $0x18] sm:$0xff] }
  0x12   :  { %841 = vmatprep.subr.bf16.mxu1 %v499_v51  ;;  %v496_v4 = vpack.c.bf16 %v485_v3, %v484_v2  ;;  %v477_v22 = vld [vmem:[%s1343_s2 + $0x8] sm:$0xff]  ;;  %v422_v52 = vld [vmem:[%s1344_s3 + $0x10] sm:$0xff]  ;;  %v424_v61 = vld [vmem:[%s1344_s3 + $0x20] sm:$0xff] }
  0x13   :  { %794 = vmatpush3.xpose.msk.msra.mxu0 %vm66_vm0, %v61_v6  ;;  %842 = vmatpush3.bf16.msra.mxu1 %v499_v51  ;;  %v421_v49 = vld [vmem:[%s1344_s3 + $0x8] sm:$0xff]  ;;  %vm438_vm3 = vcmp.ge.u32.totalorder %v422_v52, 429496730  ;;  %vm440_vm7 = vcmp.ge.u32.totalorder %v424_v61, 429496730 }
  0x14   :  { %795 = vmatprep.subr.msk.mxu0 %vm66_vm0, %v60_v7  ;;  %843 = vmatprep.subr.bf16.mxu1 %v498_v53  ;;  %vm437_vm2 = vcmp.ge.u32.totalorder %v421_v49, 429496730 }
  0x17   :  { %796 = vmatpush3.xpose.msk.msra.mxu0 %vm66_vm0, %v60_v7  ;;  %844 = vmatpush3.bf16.msra.mxu1 %v498_v53  ;;  %v482_v7 = vld [vmem:[%s1343_s2 + $0x30] sm:$0xff] }
  0x18   :  { %797 = vmatprep.subr.msk.mxu0 %vm66_vm0, %v59_v8  ;;  %845 = vmatprep.subr.bf16.mxu1 %v497_v63 }
  0x1b   :  { %798 = vmatpush3.xpose.msk.msra.mxu0 %vm66_vm0, %v59_v8  ;;  %846 = vmatpush3.bf16.msra.mxu1 %v497_v63  ;;  %v483_v8 = vld [vmem:[%s1343_s2 + $0x38] sm:$0xff] }
  0x1c   :  { %799 = vmatprep.subr.msk.mxu0 %vm66_vm0, %v58_v9  ;;  %847 = vmatprep.subr.bf16.mxu1 %v496_v4 }
  0x1f   :  { %800 = vmatpush3.xpose.msk.msra.mxu0 %vm66_vm0, %v58_v9  ;;  %848 = vmatpush3.bf16.msra.mxu1 %v496_v4  ;;  %v495_v9 = vpack.c.bf16 %v483_v8, %v482_v7 }
  0x20   :  { %801 = vmatprep.subr.msk.mxu0 %vm66_vm0, %v57_v10 }
  0x21   :  { %849 = vmatprep.subr.bf16.mxu1 %v495_v9 }
  0x23   :  { %802 = vmatpush3.xpose.msk.msra.mxu0 %vm66_vm0, %v57_v10  ;;  %850 = vmatpush3.bf16.msra.mxu1 %v495_v9 }
  0x24   :  { %803 = vmatprep.subr.msk.mxu0 %vm66_vm0, %v56_v11 }
  0x27   :  { %804 = vmatpush3.xpose.msk.msra.mxu0 %vm66_vm0, %v56_v11 }
  0x28   :  { %805 = vmatprep.subr.msk.mxu0 %vm66_vm0, %v55_v12 }
  0x2b   :  { %806 = vmatpush3.xpose.msk.msra.mxu0 %vm66_vm0, %v55_v12  ;;  %v480_v12 = vld [vmem:[%s1343_s2 + $0x20] sm:$0xff] }
  0x2c   :  { %807 = vmatprep.subr.msk.mxu0 %vm66_vm0, %v54_v13 }
  0x2f   :  { %808 = vmatpush3.xpose.msk.msra.mxu0 %vm66_vm0, %v54_v13  ;;  %v481_v13 = vld [vmem:[%s1343_s2 + $0x28] sm:$0xff] }
  0x30   :  { %809 = vmatprep.subr.msk.mxu0 %vm66_vm0, %v53_v14 }
  0x33   :  { %810 = vmatpush3.xpose.msk.msra.mxu0 %vm66_vm0, %v53_v14  ;;  %v494_v14 = vpack.c.bf16 %v481_v13, %v480_v12 }
  0x34   :  { %811 = vmatprep.subr.msk.mxu0 %vm66_vm0, %v52_v15 }
  0x35   :  { %851 = vmatprep.subr.bf16.mxu1 %v494_v14 }
  0x36   :  { %852 = vmatpush3.bf16.msra.mxu1 %v494_v14  ;;  %v427_v14 = vld [vmem:[%s1344_s3 + $0x38] sm:$0xff] }
  0x37   :  { %812 = vmatpush3.xpose.msk.msra.mxu0 %vm66_vm0, %v52_v15  ;;  %vm443_vm11 = vcmp.ge.u32.totalorder %v427_v14, 429496730 }
  0x38   :  { %813 = vmatprep.subr.msk.mxu0 %vm66_vm0, %v51_v16 }
  0x3b   :  { %814 = vmatpush3.xpose.msk.msra.mxu0 %vm66_vm0, %v51_v16 }
  0x3c   :  { %815 = vmatprep.subr.msk.mxu0 %vm66_vm0, %v50_v17 }
  0x3f   :  { %816 = vmatpush3.xpose.msk.msra.mxu0 %vm66_vm0, %v50_v17  ;;  %v478_v17 = vld [vmem:[%s1343_s2 + $0x10] sm:$0xff] }
  0x40   :  { %v493_v19 = vpack.c.bf16 %v479_v18, %v478_v17 }
  0x42   :  { %818 = vmatmul.mubr.msk.f32.vlgmr.msra.gmra.mxu0 %vm66_vm0, %v35_v20  ;;  %853 = vmatprep.subr.bf16.mxu1 %v493_v19 }
  0x43   :  { %820 = vmatprep.mubr.msk.f32.mxu0 %vm66_vm0, %v36_v21  ;;  %854 = vmatpush3.bf16.msra.mxu1 %v493_v19  ;;  %v476_v21 = vld [vmem:[%s1343_s2] sm:$0xff] }
  0x44   :  { %v492_v23 = vpack.c.bf16 %v477_v22, %v476_v21 }
  0x46   :  { %821 = vmatmul.mubr.msk.f32.gmra.mxu0 %vm66_vm0, %v37_v24  ;;  %855 = vmatprep.subr.bf16.mxu1 %v492_v23 }
  0x47   :  { %823 = vmatprep.mubr.msk.f32.mxu0 %vm66_vm0, %v38_v25  ;;  %856 = vmatpush3.bf16.msra.mxu1 %v492_v23 }
  0x4a   :  { %824 = vmatmul.mubr.msk.f32.gmra.mxu0 %vm66_vm0, %v39_v28 }
  0x4b   :  { %826 = vmatprep.mubr.msk.f32.mxu0 %vm66_vm0, %v40_v29 }
  0x4e   :  { %827 = vmatmul.mubr.msk.f32.gmra.mxu0 %vm66_vm0, %v41_v32 }
  0x4f   :  { %829 = vmatprep.mubr.msk.f32.mxu0 %vm66_vm0, %v42_v33 }
  0x52   :  { %830 = vmatmul.mubr.msk.f32.gmra.mxu0 %vm66_vm0, %v43_v36 }
  0x53   :  { %832 = vmatprep.mubr.msk.f32.mxu0 %vm66_vm0, %v44_v37 }
  0x56   :  { %833 = vmatmul.mubr.msk.f32.gmra.mxu0 %vm66_vm0, %v45_v40 }
  0x57   :  { %835 = vmatprep.mubr.msk.f32.mxu0 %vm66_vm0, %v46_v41 }
  0x5a   :  { %836 = vmatmul.mubr.msk.f32.gmra.mxu0 %vm66_vm0, %v47_v44 }
  0x5b   :  { %838 = vmatprep.mubr.msk.f32.mxu0 %vm66_vm0, %v48_v45 }
  0x5e   :  { %839 = vmatmul.mubr.msk.f32.gmra.mxu0 %vm66_vm0, %v49_v47  ;;  %v420_v47 = vld [vmem:[%s1344_s3] sm:$0xff] }
  0x5f   :  { %vm436_vm1 = vcmp.ge.u32.totalorder %v420_v47, 429496730 }
  0x60   :  { %vm713_vm5 = vmpackc.low %vm437_vm2, %vm436_vm1 }
 0x102   :  { %v1118_v54 = vpop.f32.mrf.mxu0 }
 0x104   :  { %v1120_v55 = vpop.f32.mrf.mxu0 }
 0x105   :  { %308 = vmax.xlane.f32.xlu0 %v1120_v55 }
 0x106   :  { %v1123_v56 = vpop.f32.mrf.mxu0 }
 0x107   :  { %314 = vmax.xlane.f32.xlu1 %v1123_v56 }
 0x108   :  { %v1126_v57 = vpop.f32.mrf.mxu0 }
 0x109   :  { %310 = vmax.xlane.f32.xlu0 %v1118_v54 }
 0x10a   :  { %v1129_v58 = vpop.f32.mrf.mxu0 }
 0x10b   :  { %312 = vmax.xlane.f32.xlu1 %v1126_v57 }
 0x10c   :  { %v1132_v59 = vpop.f32.mrf.mxu0 }
 0x10d   :  { %316 = vmax.xlane.f32.xlu0 %v1132_v59 }
 0x10e   :  { %v1135_v60 = vpop.f32.mrf.mxu0 }
 0x10f   :  { %318 = vmax.xlane.f32.xlu1 %v1129_v58 }
 0x110   :  { %v1144_v0 = vpop.f32.mrf.mxu0 }
 0x111   :  { %320 = vmax.xlane.f32.xlu0 %v1144_v0 }
 0x112   :  { %v1147_v1 = vpop.f32.mrf.mxu0 }
 0x113   :  { %322 = vmax.xlane.f32.xlu1 %v1135_v60 }
 0x114   :  { %v1156_v5 = vpop.f32.mrf.mxu0 }
 0x115   :  { %324 = vmax.xlane.f32.xlu0 %v1156_v5 }
 0x116   :  { %v1159_v6 = vpop.f32.mrf.mxu0 }
 0x117   :  { %326 = vmax.xlane.f32.xlu1 %v1147_v1 }
 0x118   :  { %v1168_v10 = vpop.f32.mrf.mxu0 }
 0x119   :  { %328 = vmax.xlane.f32.xlu0 %v1168_v10 }
 0x11a   :  { %v1171_v11 = vpop.f32.mrf.mxu0 }
 0x11b   :  { %330 = vmax.xlane.f32.xlu1 %v1159_v6 }
 0x11c   :  { %v1180_v15 = vpop.f32.mrf.mxu0 }
 0x11d   :  { %332 = vmax.xlane.f32.xlu0 %v1180_v15 }
 0x11e   :  { %v1183_v16 = vpop.f32.mrf.mxu0 }
 0x11f   :  { %334 = vmax.xlane.f32.xlu1 %v1171_v11 }
 0x120   :  { %v1192_v20 = vpop.f32.mrf.mxu0 }
 0x121   :  { %336 = vmax.xlane.f32.xlu0 %v1192_v20 }
 0x123   :  { %338 = vmax.xlane.f32.xlu1 %v1183_v16 }
 0x18e   :  { %v309_v24 = vpop.xlane.xlu0 %308 }
 0x18f   :  { %v340_v25 = vsub.f32 %v1120_v55, %v309_v24  ;;  %v423_v55 = vld [vmem:[%s1344_s3 + $0x18] sm:$0xff] }
 0x190   :  { %v315_v26 = vpop.xlane.xlu1 %314  ;;  %vm439_vm4 = vcmp.ge.u32.totalorder %v423_v55, 429496730 }
 0x191   :  { %v356_v27 = vmul.f32 1.442695, %v340_v25  ;;  %v343_v28 = vsub.f32 %v1123_v56, %v315_v26  ;;  %vm1235_vm6 = vmpackc.low %vm439_vm4, %vm438_vm3  ;;  %v429_v26 = vld [vmem:[%s1344_s3 + $0x48] sm:$0xff] }
 0x192   :  { %v311_v29 = vpop.xlane.xlu0 %310  ;;  %vm445_vm14 = vcmp.ge.u32.totalorder %v429_v26, 429496730 }
 0x193   :  { %873 = vpow2.f32 %v356_v27  ;;  %v341_v30 = vsub.f32 %v1118_v54, %v311_v29  ;;  %v362_v31 = vmul.f32 1.442695, %v343_v28 }
 0x194   :  { %v313_v32 = vpop.xlane.xlu1 %312 }
 0x195   :  { %v358_v33 = vmul.f32 1.442695, %v341_v30  ;;  %v342_v34 = vsub.f32 %v1126_v57, %v313_v32  ;;  %v430_v32 = vld [vmem:[%s1344_s3 + $0x50] sm:$0xff] }
 0x196   :  { %v317_v35 = vpop.xlane.xlu0 %316  ;;  %vm446_vm1 = vcmp.ge.u32.totalorder %v430_v32, 429496730 }
 0x197   :  { %875 = vpow2.f32 %v358_v33  ;;  %v360_v36 = vmul.f32 1.442695, %v342_v34  ;;  %v344_v37 = vsub.f32 %v1132_v59, %v317_v35  ;;  %v431_v33 = vld [vmem:[%s1344_s3 + $0x58] sm:$0xff] }
 0x198   :  { %877 = vpow2.f32 %v362_v31  ;;  %v319_v38 = vpop.xlane.xlu1 %318  ;;  %vm447_vm2 = vcmp.ge.u32.totalorder %v431_v33, 429496730 }
 0x199   :  { %879 = vpow2.f32 %v360_v36  ;;  %v364_v39 = vmul.f32 1.442695, %v344_v37  ;;  %v345_v40 = vsub.f32 %v1129_v58, %v319_v38  ;;  %v432_v36 = vld [vmem:[%s1344_s3 + $0x60] sm:$0xff]  ;;  %v433_v37 = vld [vmem:[%s1344_s3 + $0x68] sm:$0xff]  ;;  %vm728_vm3 = vmpackc.low %vm447_vm2, %vm446_vm1 }
 0x19a   :  { %v321_v41 = vpop.xlane.xlu0 %320  ;;  %vm448_vm4 = vcmp.ge.u32.totalorder %v432_v36, 429496730 }
 0x19b   :  { %v366_v42 = vmul.f32 1.442695, %v345_v40  ;;  %v346_v43 = vsub.f32 %v1144_v0, %v321_v41  ;;  %881 = vpow2.f32 %v364_v39  ;;  %v425_v0 = vld [vmem:[%s1344_s3 + $0x28] sm:$0xff]  ;;  %v434_v41 = vld [vmem:[%s1344_s3 + $0x70] sm:$0xff] }
 0x19c   :  { %v323_v44 = vpop.xlane.xlu1 %322  ;;  %vm441_vm8 = vcmp.ge.u32.totalorder %v425_v0, 429496730 }
 0x19d   :  { %883 = vpow2.f32 %v366_v42  ;;  %v368_v45 = vmul.f32 1.442695, %v346_v43  ;;  %v347_v46 = vsub.f32 %v1135_v60, %v323_v44  ;;  %vm719_vm9 = vmpackc.low %vm441_vm8, %vm440_vm7  ;;  %v435_v42 = vld [vmem:[%s1344_s3 + $0x78] sm:$0xff]  ;;  %vm450_vm7 = vcmp.ge.u32.totalorder %v434_v41, 429496730 }
 0x19e   :  { %v325_v48 = vpop.xlane.xlu0 %324  ;;  %vm451_vm8 = vcmp.ge.u32.totalorder %v435_v42, 429496730 }
 0x19f   :  { %v370_v50 = vmul.f32 1.442695, %v347_v46  ;;  %v348_v51 = vsub.f32 %v1156_v5, %v325_v48  ;;  %885 = vpow2.f32 %v368_v45 }
 0x1a0   :  { %v874_v53 = vpop.eup %873  ;;  %v327_v54 = vpop.xlane.xlu1 %326 }
 0x1a1   :  { %887 = vpow2.f32 %v370_v50  ;;  %v372_v56 = vmul.f32 1.442695, %v348_v51  ;;  %v349_v57 = vsub.f32 %v1147_v1, %v327_v54  ;;  %388 = vadd.xlane.f32.xlu0 %v874_v53 }
 0x1a2   :  { %v329_v58 = vpop.xlane.xlu0 %328 }
 0x1a3   :  { %v374_v59 = vmul.f32 1.442695, %v349_v57  ;;  %v350_v60 = vsub.f32 %v1168_v10, %v329_v58  ;;  %889 = vpow2.f32 %v372_v56 }
 0x1a4   :  { %v876_v62 = vpop.eup %875  ;;  %v331_v63 = vpop.xlane.xlu1 %330 }
 0x1a5   :  { %v878_v1 = vpop.eup %877  ;;  %891 = vpow2.f32 %v374_v59  ;;  %v376_v2 = vmul.f32 1.442695, %v350_v60  ;;  %v351_v3 = vsub.f32 %v1159_v6, %v331_v63  ;;  %390 = vadd.xlane.f32.xlu1 %v876_v62  ;;  %v714_v4 = vpack.c.bf16 %v876_v62, %v874_v53  ;;  %v426_v6 = vld [vmem:[%s1344_s3 + $0x30] sm:$0xff] }
 0x1a6   :  { %v880_v5 = vpop.eup %879  ;;  %v333_v7 = vpop.xlane.xlu0 %332  ;;  %vm442_vm10 = vcmp.ge.u32.totalorder %v426_v6, 429496730 }
 0x1a7   :  { %v378_v9 = vmul.f32 1.442695, %v351_v3  ;;  %v352_v10 = vsub.f32 %v1180_v15, %v333_v7  ;;  %857 = vmatprep.mubr.msk.bf16.mxu1 %vm713_vm5, %v714_v4  ;;  %392 = vadd.xlane.f32.xlu0 %v880_v5  ;;  %v717_v12 = vpack.c.bf16 %v878_v1, %v880_v5  ;;  %893 = vpow2.f32 %v376_v2  ;;  %vm722_vm12 = vmpackc.low %vm443_vm11, %vm442_vm10 }
 0x1a8   :  { %v335_v13 = vpop.xlane.xlu1 %334  ;;  %v882_v17 = vpop.eup %881  ;;  %vm449_vm5 = vcmp.ge.u32.totalorder %v433_v37, 429496730 }
 0x1a9   :  { %895 = vpow2.f32 %v378_v9  ;;  %v380_v18 = vmul.f32 1.442695, %v352_v10  ;;  %v353_v19 = vsub.f32 %v1171_v11, %v335_v13  ;;  %858 = vmatmul.mubr.msk.bf16.vlgmr.msra.gmra.mxu1 %vm1235_vm6, %v717_v12  ;;  %394 = vadd.xlane.f32.xlu1 %v878_v1  ;;  %v428_v11 = vld [vmem:[%s1344_s3 + $0x40] sm:$0xff]  ;;  %vm731_vm6 = vmpackc.low %vm449_vm5, %vm448_vm4 }
 0x1aa   :  { %v884_v15 = vpop.eup %883  ;;  %v337_v21 = vpop.xlane.xlu0 %336  ;;  %vm444_vm13 = vcmp.ge.u32.totalorder %v428_v11, 429496730 }
 0x1ab   :  { %v382_v22 = vmul.f32 1.442695, %v353_v19  ;;  %v354_v23 = vsub.f32 %v1192_v20, %v337_v21  ;;  %396 = vadd.xlane.f32.xlu0 %v882_v17  ;;  %v720_v24 = vpack.c.bf16 %v884_v15, %v882_v17  ;;  %897 = vpow2.f32 %v380_v18  ;;  %vm725_vm15 = vmpackc.low %vm445_vm14, %vm444_vm13 }
 0x1ac   :  { %v339_v25 = vpop.xlane.xlu1 %338  ;;  %v886_v27 = vpop.eup %885 }
 0x1ad   :  { %899 = vpow2.f32 %v382_v22  ;;  %v384_v28 = vmul.f32 1.442695, %v354_v23  ;;  %v355_v29 = vsub.f32 %v1183_v16, %v339_v25  ;;  %861 = vmatprep.mubr.msk.bf16.mxu1 %vm719_vm9, %v720_v24  ;;  %398 = vadd.xlane.f32.xlu1 %v884_v15  ;;  %vm734_vm9 = vmpackc.low %vm451_vm8, %vm450_vm7 }
 0x1ae   :  { %v888_v20 = vpop.eup %887 }
 0x1af   :  { %v386_v30 = vmul.f32 1.442695, %v355_v29  ;;  %400 = vadd.xlane.f32.xlu0 %v886_v27  ;;  %v723_v31 = vpack.c.bf16 %v888_v20, %v886_v27  ;;  %901 = vpow2.f32 %v384_v28 }
 0x1b0   :  { %v890_v16 = vpop.eup %889 }
 0x1b1   :  { %903 = vpow2.f32 %v386_v30  ;;  %862 = vmatmul.mubr.msk.bf16.gmra.mxu1 %vm722_vm12, %v723_v31  ;;  %402 = vadd.xlane.f32.xlu1 %v888_v20 }
 0x1b2   :  { %v892_v34 = vpop.eup %891 }
 0x1b3   :  { %404 = vadd.xlane.f32.xlu0 %v890_v16  ;;  %v726_v35 = vpack.c.bf16 %v892_v34, %v890_v16 }
 0x1b4   :  { %v894_v38 = vpop.eup %893 }
 0x1b5   :  { %865 = vmatprep.mubr.msk.bf16.mxu1 %vm725_vm15, %v726_v35  ;;  %406 = vadd.xlane.f32.xlu1 %v892_v34 }
 0x1b6   :  { %v896_v39 = vpop.eup %895 }
 0x1b7   :  { %408 = vadd.xlane.f32.xlu0 %v894_v38  ;;  %v729_v40 = vpack.c.bf16 %v896_v39, %v894_v38 }
 0x1b8   :  { %v898_v43 = vpop.eup %897 }
 0x1b9   :  { %866 = vmatmul.mubr.msk.bf16.gmra.mxu1 %vm728_vm3, %v729_v40  ;;  %410 = vadd.xlane.f32.xlu1 %v896_v39 }
 0x1ba   :  { %v900_v44 = vpop.eup %899 }
 0x1bb   :  { %412 = vadd.xlane.f32.xlu0 %v898_v43  ;;  %v732_v45 = vpack.c.bf16 %v900_v44, %v898_v43 }
 0x1bc   :  { %v902_v46 = vpop.eup %901 }
 0x1bd   :  { %869 = vmatprep.mubr.msk.bf16.mxu1 %vm731_vm6, %v732_v45  ;;  %414 = vadd.xlane.f32.xlu1 %v900_v44 }
 0x1be   :  { %v904_v47 = vpop.eup %903 }
 0x1bf   :  { %416 = vadd.xlane.f32.xlu0 %v902_v46  ;;  %v735_v48 = vpack.c.bf16 %v904_v47, %v902_v46 }
 0x1c1   :  { %418 = vadd.xlane.f32.xlu1 %v904_v47  ;;  %870 = vmatmul.mubr.msk.bf16.gmra.mxu1 %vm734_vm9, %v735_v48 }
 0x22a   :  { %v389_v49 = vpop.xlane.xlu0 %388 }
 0x22b   :  { %v597_v58 = vmul.f32 0.9, %v389_v49 }
 0x22e   :  { %v391_v50 = vpop.xlane.xlu1 %390 }
 0x22f   :  { %v598_v61 = vmul.f32 0.9, %v391_v50 }
 0x230   :  { %v393_v51 = vpop.xlane.xlu0 %392 }
 0x231   :  { %v599_v56 = vmul.f32 0.9, %v393_v51 }
 0x232   :  { %v395_v52 = vpop.xlane.xlu1 %394 }
 0x233   :  { %905 = vrcp.f32 %v599_v56  ;;  %v600_v60 = vmul.f32 0.9, %v395_v52 }
 0x234   :  { %v397_v53 = vpop.xlane.xlu0 %396  ;;  %907 = vrcp.f32 %v597_v58 }
 0x235   :  { %909 = vrcp.f32 %v600_v60  ;;  %v601_v1 = vmul.f32 0.9, %v397_v53 }
 0x236   :  { %v399_v54 = vpop.xlane.xlu1 %398  ;;  %911 = vrcp.f32 %v598_v61 }
 0x237   :  { %v602_v4 = vmul.f32 0.9, %v399_v54 }
 0x238   :  { %v401_v55 = vpop.xlane.xlu0 %400 }
 0x239   :  { %v603_v63 = vmul.f32 0.9, %v401_v55 }
 0x23a   :  { %v403_v57 = vpop.xlane.xlu1 %402 }
 0x23b   :  { %913 = vrcp.f32 %v603_v63  ;;  %v604_v2 = vmul.f32 0.9, %v403_v57 }
 0x23c   :  { %v405_v59 = vpop.xlane.xlu0 %404  ;;  %915 = vrcp.f32 %v601_v1 }
 0x23d   :  { %917 = vrcp.f32 %v604_v2  ;;  %v605_v10 = vmul.f32 0.9, %v405_v59 }
 0x23e   :  { %v407_v62 = vpop.xlane.xlu1 %406  ;;  %919 = vrcp.f32 %v602_v4 }
 0x23f   :  { %v606_v22 = vmul.f32 0.9, %v407_v62 }
 0x240   :  { %v409_v0 = vpop.xlane.xlu0 %408  ;;  %v906_v8 = vpop.eup %905 }
 0x241   :  { %v607_v7 = vmul.f32 0.9, %v409_v0  ;;  %v908_v6 = vpop.eup %907 }
 0x242   :  { %v411_v3 = vpop.xlane.xlu1 %410  ;;  %v910_v19 = vpop.eup %909 }
 0x243   :  { %921 = vrcp.f32 %v607_v7  ;;  %v608_v17 = vmul.f32 0.9, %v411_v3  ;;  %v912_v24 = vpop.eup %911 }
 0x244   :  { %v413_v5 = vpop.xlane.xlu0 %412  ;;  %923 = vrcp.f32 %v605_v10 }
 0x245   :  { %925 = vrcp.f32 %v608_v17  ;;  %v609_v20 = vmul.f32 0.9, %v413_v5 }
 0x246   :  { %v415_v13 = vpop.xlane.xlu1 %414  ;;  %927 = vrcp.f32 %v606_v22 }
 0x247   :  { %v610_v36 = vmul.f32 0.9, %v415_v13 }
 0x248   :  { %v417_v15 = vpop.xlane.xlu0 %416  ;;  %v914_v27 = vpop.eup %913 }
 0x249   :  { %v611_v11 = vmul.f32 0.9, %v417_v15  ;;  %v916_v31 = vpop.eup %915 }
 0x24a   :  { %v419_v28 = vpop.xlane.xlu1 %418  ;;  %v918_v34 = vpop.eup %917 }
 0x24b   :  { %929 = vrcp.f32 %v611_v11  ;;  %v612_v33 = vmul.f32 0.9, %v419_v28  ;;  %v920_v38 = vpop.eup %919 }
 0x24c   :  { %931 = vrcp.f32 %v609_v20 }
 0x24d   :  { %933 = vrcp.f32 %v612_v33 }
 0x24e   :  { %935 = vrcp.f32 %v610_v36 }
 0x250   :  { %v922_v41 = vpop.eup %921 }
 0x251   :  { %v924_v44 = vpop.eup %923 }
 0x252   :  { %v926_v47 = vpop.eup %925 }
 0x253   :  { %v928_v50 = vpop.eup %927 }
 0x258   :  { %v930_v53 = vpop.eup %929 }
 0x259   :  { %v932_v56 = vpop.eup %931 }
 0x25a   :  { %v934_v59 = vpop.eup %933 }
 0x25b   :  { %v936_v62 = vpop.eup %935 }
 0x269   :  { %v859_v9 = vpop.f32.mrf.mxu1 }
 0x26a   :  { %v647_v12 = vmul.f32 %v906_v8, %v859_v9 }
 0x26b   :  { %v534_v14 = vpop.f32.mrf.mxu1 }
 0x26c   :  { %663 = vst.msk [vmem:[%s1345_s4 + $0x10] sm:$0xff] %vm66_vm0, %v647_v12  ;;  %v645_v18 = vmul.f32 %v908_v6, %v534_v14 }
 0x26d   :  { %v860_v21 = vpop.f32.mrf.mxu1 }
 0x26e   :  { %661 = vst.msk [vmem:[%s1345_s4] sm:$0xff] %vm66_vm0, %v645_v18  ;;  %v648_v23 = vmul.f32 %v910_v19, %v860_v21 }
 0x26f   :  { %v537_v25 = vpop.f32.mrf.mxu1 }
 0x270   :  { %664 = vst.msk [vmem:[%s1345_s4 + $0x18] sm:$0xff] %vm66_vm0, %v648_v23  ;;  %v646_v26 = vmul.f32 %v912_v24, %v537_v25 }
 0x271   :  { %v863_v29 = vpop.f32.mrf.mxu1 }
 0x272   :  { %662 = vst.msk [vmem:[%s1345_s4 + $0x8] sm:$0xff] %vm66_vm0, %v646_v26  ;;  %v651_v30 = vmul.f32 %v914_v27, %v863_v29 }
 0x273   :  { %v550_v32 = vpop.f32.mrf.mxu1 }
 0x274   :  { %667 = vst.msk [vmem:[%s1345_s4 + $0x30] sm:$0xff] %vm66_vm0, %v651_v30  ;;  %v649_v16 = vmul.f32 %v916_v31, %v550_v32 }
 0x275   :  { %v864_v35 = vpop.f32.mrf.mxu1 }
 0x276   :  { %665 = vst.msk [vmem:[%s1345_s4 + $0x20] sm:$0xff] %vm66_vm0, %v649_v16  ;;  %v652_v37 = vmul.f32 %v918_v34, %v864_v35 }
 0x277   :  { %v553_v39 = vpop.f32.mrf.mxu1 }
 0x278   :  { %668 = vst.msk [vmem:[%s1345_s4 + $0x38] sm:$0xff] %vm66_vm0, %v652_v37  ;;  %v650_v40 = vmul.f32 %v920_v38, %v553_v39 }
 0x279   :  { %v867_v42 = vpop.f32.mrf.mxu1 }
 0x27a   :  { %666 = vst.msk [vmem:[%s1345_s4 + $0x28] sm:$0xff] %vm66_vm0, %v650_v40  ;;  %v655_v43 = vmul.f32 %v922_v41, %v867_v42 }
 0x27b   :  { %v566_v45 = vpop.f32.mrf.mxu1 }
 0x27c   :  { %671 = vst.msk [vmem:[%s1345_s4 + $0x50] sm:$0xff] %vm66_vm0, %v655_v43  ;;  %v653_v46 = vmul.f32 %v924_v44, %v566_v45 }
 0x27d   :  { %v868_v48 = vpop.f32.mrf.mxu1 }
 0x27e   :  { %669 = vst.msk [vmem:[%s1345_s4 + $0x40] sm:$0xff] %vm66_vm0, %v653_v46  ;;  %v656_v49 = vmul.f32 %v926_v47, %v868_v48 }
 0x27f   :  { %v569_v51 = vpop.f32.mrf.mxu1 }
 0x280   :  { %672 = vst.msk [vmem:[%s1345_s4 + $0x58] sm:$0xff] %vm66_vm0, %v656_v49  ;;  %v654_v52 = vmul.f32 %v928_v50, %v569_v51 }
 0x281   :  { %v871_v54 = vpop.f32.mrf.mxu1 }
 0x282   :  { %670 = vst.msk [vmem:[%s1345_s4 + $0x48] sm:$0xff] %vm66_vm0, %v654_v52  ;;  %v659_v55 = vmul.f32 %v930_v53, %v871_v54 }
 0x283   :  { %v582_v57 = vpop.f32.mrf.mxu1 }
 0x284   :  { %675 = vst.msk [vmem:[%s1345_s4 + $0x70] sm:$0xff] %vm66_vm0, %v659_v55  ;;  %v657_v58 = vmul.f32 %v932_v56, %v582_v57 }
 0x285   :  { %v872_v60 = vpop.f32.mrf.mxu1 }
 0x286   :  { %673 = vst.msk [vmem:[%s1345_s4 + $0x60] sm:$0xff] %vm66_vm0, %v657_v58  ;;  %v660_v61 = vmul.f32 %v934_v59, %v872_v60 }
 0x287   :  { %v585_v63 = vpop.f32.mrf.mxu1 }
 0x288   :  { %676 = vst.msk [vmem:[%s1345_s4 + $0x78] sm:$0xff] %vm66_vm0, %v660_v61  ;;  %v658_v0 = vmul.f32 %v936_v62, %v585_v63 }
 0x28a   :  { %674 = vst.msk [vmem:[%s1345_s4 + $0x68] sm:$0xff] %vm66_vm0, %v658_v0 }

</bundles_post_ra>
